<compile_context>
chip_gen: v7x
topology: tpu7x:2x2x1
jax: 0.10.0
libtpu: 0.0.40
codegen_flags: <defaults>
</compile_context>

<pallas_src>
import jax
import jax.numpy as jnp
from jax.experimental import pallas as pl
from jax.experimental.pallas import tpu as pltpu

EPS = 1e-12
POWER_ITERATIONS = 1  # matches the PyTorch default


def sn_conv1x1_kernel(w_ref, u_ref, b_ref, x_ref, y_ref, w_sn_ref):
    """Spectral-normalized 1x1 conv, tiled over (batch, spatial).

    w_ref:    (Cout, Cin)        -- W_bar viewed as a matrix
    u_ref:    (Cout, 1)          -- persistent u vector (column)
    b_ref:    (Cout, 1)          -- conv bias (column, broadcasts over lanes)
    x_ref:    (1, Cin, TILE_HW)  -- input pixels for this (n, hw-tile)
    y_ref:    (1, Cout, TILE_HW) -- output pixels
    w_sn_ref: (Cout, Cin) f32    -- VMEM scratch holding W / sigma
    """
    # Hoisted prologue: power iteration + sigma + normalize, once per batch
    # sweep (hw axis is "arbitrary" => sequential, so tile 0 runs first).
    @pl.when(pl.program_id(1) == 0)
    def _():
        w = w_ref[...].astype(jnp.float32)          # (Cout, Cin)
        u = u_ref[...].astype(jnp.float32)          # (Cout, 1)
        wu = u
        for _ in range(POWER_ITERATIONS):
            # v = l2normalize(W^T u)
            wv = jnp.sum(w * u, axis=0, keepdims=True)          # (1, Cin)
            v = wv / (jnp.sqrt(jnp.sum(wv * wv)) + EPS)
            # u = l2normalize(W v)
            wu = jnp.sum(w * v, axis=1, keepdims=True)          # (Cout, 1)
            u = wu / (jnp.sqrt(jnp.sum(wu * wu)) + EPS)
        # sigma = u . (W v); multiply by the hoisted scalar reciprocal.
        sigma = jnp.sum(u * wu)
        w_sn_ref[...] = w * (1.0 / sigma)

    # 1x1 conv == matmul over channels (MXU): (Cout,Cin) @ (Cin,TILE_HW).
    x = x_ref[0]                                                # (Cin, TILE_HW)
    y = jnp.dot(w_sn_ref[...], x, preferred_element_type=jnp.float32)
    y_ref[0] = (y + b_ref[...]).astype(y_ref.dtype)


def _pick_tile_hw(hw, cin, cout, budget_bytes=8 << 20):
    """Largest multiple-of-128 tile dividing hw that fits a small VMEM budget
    (double-buffered input + output tiles)."""
    if hw % 128 != 0:
        return hw  # full-extent block is always legal
    max_tile = budget_bytes // (2 * (cin + cout) * 4)
    max_tile = max(128, (max_tile // 128) * 128)
    tile = min(hw, max_tile)
    tile -= tile % 128
    while hw % tile != 0:
        tile -= 128
    return tile


def spectral_norm_conv1x1(x, w, b, u, tile_hw=None):
    """x: (N, Cin, H, W) NCHW; w: (Cout, Cin, 1, 1); b: (Cout,); u: (Cout,)."""
    N, Cin, H, W = x.shape
    Cout = w.shape[0]
    HW = H * W

    if tile_hw is None:
        tile_hw = _pick_tile_hw(HW, Cin, Cout)
    assert HW % tile_hw == 0, "tile_hw must divide H*W"
    n_hw_tiles = HW // tile_hw

    x_mat = x.reshape(N, Cin, HW)          # pure reshape, no transpose
    w_mat = w.reshape(Cout, Cin)
    u_col = u.reshape(Cout, 1)
    b_col = b.reshape(Cout, 1)

    flops = 2 * N * HW * Cin * Cout
    bytes_accessed = 4 * (N * HW * Cin + N * HW * Cout + Cout * Cin + 2 * Cout)

    y_mat = pl.pallas_call(
        sn_conv1x1_kernel,
        out_shape=jax.ShapeDtypeStruct((N, Cout, HW), x.dtype),
        grid=(N, n_hw_tiles),
        in_specs=[
            pl.BlockSpec((Cout, Cin), lambda n, t: (0, 0)),          # W (resident)
            pl.BlockSpec((Cout, 1), lambda n, t: (0, 0)),            # u (resident)
            pl.BlockSpec((Cout, 1), lambda n, t: (0, 0)),            # bias (resident)
            pl.BlockSpec((1, Cin, tile_hw), lambda n, t: (n, 0, t)),  # x tile
        ],
        out_specs=pl.BlockSpec((1, Cout, tile_hw), lambda n, t: (n, 0, t)),
        scratch_shapes=[pltpu.VMEM((Cout, Cin), jnp.float32)],
        compiler_params=pltpu.CompilerParams(
            dimension_semantics=("parallel", "arbitrary"),
            vmem_limit_bytes=32 << 20,
        ),
        cost_estimate=pl.CostEstimate(
            flops=flops, transcendentals=0, bytes_accessed=bytes_accessed),
    )(w_mat, u_col, b_col, x_mat)

    return y_mat.reshape(N, Cout, H, W)    # pure reshape, no transpose


def _l2normalize(x, eps=EPS):
    return x / (jnp.linalg.norm(x) + eps)


def reference_forward(x, w, b, u, power_iterations=POWER_ITERATIONS):
    """Pure-JAX reference mirroring SpectralNorm2d.forward + Conv2d(1x1)."""
    Cout = w.shape[0]
    w_mat = w.reshape(Cout, -1)
    v = None
    for _ in range(power_iterations):
        v = _l2normalize(w_mat.T @ u)
        u = _l2normalize(w_mat @ v)
    sigma = u @ (w_mat @ v)
    w_sn = w / sigma
    y = jax.lax.conv_general_dilated(
        x, w_sn, window_strides=(1, 1), padding="VALID",
        dimension_numbers=("NCHW", "OIHW", "NCHW"))
    return y + b.reshape(1, -1, 1, 1)


if __name__ == "__main__":
    key = jax.random.PRNGKey(0)
    kx, kw, kb, ku, kv = jax.random.split(key, 5)

    # Wrapped module: Conv2d(in_channels=4, out_channels=8, kernel_size=1)
    N, Cin, H, W = 2, 4, 16, 16
    Cout = 8

    x = jax.random.normal(kx, (N, Cin, H, W), dtype=jnp.float32)
    w_bar = 0.1 * jax.random.normal(kw, (Cout, Cin, 1, 1), dtype=jnp.float32)
    bias = 0.05 * jax.random.normal(kb, (Cout,), dtype=jnp.float32)

    # u, v ~ N(0,1) then L2-normalized (as in __init__). v is only consumed
    # when power_iterations == 0, so it is not passed to the kernel.
    u0 = _l2normalize(jax.random.normal(ku, (Cout,), dtype=jnp.float32))
    v0 = _l2normalize(jax.random.normal(kv, (Cin,), dtype=jnp.float32))

    # tile_hw=128 -> grid (N, 2): exercises the tiled/pipelined path and the
    # pl.when-gated power-iteration prologue even at these small shapes.
    y = jax.block_until_ready(
        spectral_norm_conv1x1(x, w_bar, bias, u0, tile_hw=128))
    y_ref = reference_forward(x, w_bar, bias, u0)

    assert y.shape == (N, Cout, H, W)
    assert jnp.allclose(y, y_ref, atol=1e-5, rtol=1e-5), "mismatch vs reference"
    print("KERNEL_OK")
</pallas_src>

<mosaic_0001>
module attributes {stable_mosaic.version = 11 : i64} {
  func.func @sn_conv1x1_kernel(%arg0: i32, %arg1: i32, %arg2: memref<8x4xf32, #tpu.memory_space<vmem>>, %arg3: memref<8x1xf32, #tpu.memory_space<vmem>>, %arg4: memref<8x1xf32, #tpu.memory_space<vmem>>, %arg5: memref<1x4x128xf32, #tpu.memory_space<vmem>>, %arg6: memref<1x8x128xf32, #tpu.memory_space<vmem>>, %arg7: memref<8x4xf32, #tpu.memory_space<vmem>>) attributes {dimension_semantics = [#tpu.dimension_semantics<parallel>, #tpu.dimension_semantics<arbitrary>], iteration_bounds = array<i64: 2, 2>, scalar_prefetch = 0 : i64, scratch_operands = 1 : i64, tpu.core_type = #tpu.core_type<tc>, window_params = [{pipeline_mode = #tpu.pipeline_mode<synchronous>, transform_indices = @transform_0, window_bounds = array<i64: 8, 4>}, {pipeline_mode = #tpu.pipeline_mode<synchronous>, transform_indices = @transform_1, window_bounds = array<i64: 8, 1>}, {pipeline_mode = #tpu.pipeline_mode<synchronous>, transform_indices = @transform_2, window_bounds = array<i64: 8, 1>}, {transform_indices = @transform_3, window_bounds = array<i64: 1, 4, 128>}, {transform_indices = @transform_4, window_bounds = array<i64: 1, 8, 128>}]} {
    %c0_i32 = arith.constant 0 : i32
    %0 = arith.cmpi eq, %arg1, %c0_i32 : i32
    %1 = arith.extui %0 : i1 to i32
    %c0_i32_0 = arith.constant 0 : i32
    %2 = arith.cmpi ne, %1, %c0_i32_0 : i32
    scf.if %2 {
      %c0_10 = arith.constant 0 : index
      %c0_11 = arith.constant 0 : index
      %13 = vector.load %arg2[%c0_10, %c0_11] : memref<8x4xf32, #tpu.memory_space<vmem>>, vector<8x4xf32>
      %c0_12 = arith.constant 0 : index
      %c0_13 = arith.constant 0 : index
      %14 = vector.load %arg3[%c0_12, %c0_13] : memref<8x1xf32, #tpu.memory_space<vmem>>, vector<8x1xf32>
      %15 = vector.broadcast %14 : vector<8x1xf32> to vector<8x4xf32>
      %16 = arith.mulf %13, %15 : vector<8x4xf32>
      %cst_14 = arith.constant dense<0.000000e+00> : vector<4xf32>
      %17 = vector.multi_reduction <add>, %16, %cst_14 [0] : vector<8x4xf32> to vector<4xf32>
      %18 = vector.shape_cast %17 : vector<4xf32> to vector<1x4xf32>
      %19 = arith.mulf %18, %18 : vector<1x4xf32>
      %20 = vector.shape_cast %19 : vector<1x4xf32> to vector<1x1x4xf32>
      %cst_15 = arith.constant dense<0.000000e+00> : vector<1xf32>
      %21 = vector.multi_reduction <add>, %20, %cst_15 [1, 2] : vector<1x1x4xf32> to vector<1xf32>
      %22 = vector.shape_cast %21 : vector<1xf32> to vector<1x1x1xf32>
      %23 = vector.extract %22[0, 0, 0] : f32 from vector<1x1x1xf32>
      %24 = math.sqrt %23 : f32
      %cst_16 = arith.constant 9.99999996E-13 : f32
      %25 = arith.addf %24, %cst_16 : f32
      %26 = vector.broadcast %25 : f32 to vector<1x4xf32>
      %27 = arith.divf %18, %26 : vector<1x4xf32>
      %28 = vector.broadcast %27 : vector<1x4xf32> to vector<8x4xf32>
      %29 = arith.mulf %13, %28 : vector<8x4xf32>
      %cst_17 = arith.constant dense<0.000000e+00> : vector<8xf32>
      %30 = vector.multi_reduction <add>, %29, %cst_17 [1] : vector<8x4xf32> to vector<8xf32>
      %31 = vector.shape_cast %30 : vector<8xf32> to vector<8x1xf32>
      %32 = arith.mulf %31, %31 : vector<8x1xf32>
      %33 = vector.shape_cast %32 : vector<8x1xf32> to vector<1x8x1xf32>
      %cst_18 = arith.constant dense<0.000000e+00> : vector<1xf32>
      %34 = vector.multi_reduction <add>, %33, %cst_18 [1, 2] : vector<1x8x1xf32> to vector<1xf32>
      %35 = vector.shape_cast %34 : vector<1xf32> to vector<1x1x1xf32>
      %36 = vector.extract %35[0, 0, 0] : f32 from vector<1x1x1xf32>
      %37 = math.sqrt %36 : f32
      %cst_19 = arith.constant 9.99999996E-13 : f32
      %38 = arith.addf %37, %cst_19 : f32
      %39 = vector.broadcast %38 : f32 to vector<8x1xf32>
      %40 = arith.divf %31, %39 : vector<8x1xf32>
      %41 = arith.mulf %40, %31 : vector<8x1xf32>
      %42 = vector.shape_cast %41 : vector<8x1xf32> to vector<1x8x1xf32>
      %cst_20 = arith.constant dense<0.000000e+00> : vector<1xf32>
      %43 = vector.multi_reduction <add>, %42, %cst_20 [1, 2] : vector<1x8x1xf32> to vector<1xf32>
      %44 = vector.shape_cast %43 : vector<1xf32> to vector<1x1x1xf32>
      %45 = vector.extract %44[0, 0, 0] : f32 from vector<1x1x1xf32>
      %cst_21 = arith.constant 1.000000e+00 : f32
      %46 = arith.divf %cst_21, %45 : f32
      %47 = vector.broadcast %46 : f32 to vector<8x4xf32>
      %48 = arith.mulf %13, %47 : vector<8x4xf32>
      %c0_22 = arith.constant 0 : index
      %c0_23 = arith.constant 0 : index
      %49 = vector.load %arg7[%c0_22, %c0_23] : memref<8x4xf32, #tpu.memory_space<vmem>>, vector<8x4xf32>
      tpu.vector_store %arg7[%c0_22, %c0_23], %48 {strides = array<i32>} : memref<8x4xf32, #tpu.memory_space<vmem>>, vector<8x4xf32>,
    } else {
    }
    %c0 = arith.constant 0 : index
    %c0_1 = arith.constant 0 : index
    %c0_2 = arith.constant 0 : index
    %3 = vector.load %arg5[%c0, %c0_1, %c0_2] : memref<1x4x128xf32, #tpu.memory_space<vmem>>, vector<1x4x128xf32>
    %4 = vector.shape_cast %3 : vector<1x4x128xf32> to vector<4x128xf32>
    %c0_3 = arith.constant 0 : index
    %c0_4 = arith.constant 0 : index
    %5 = vector.load %arg7[%c0_3, %c0_4] : memref<8x4xf32, #tpu.memory_space<vmem>>, vector<8x4xf32>
    %cst = arith.constant dense<0.000000e+00> : vector<8x128xf32>
    %6 = tpu.matmul %5, %4, %cst {dimension_numbers = #tpu.dot_dimension_numbers<[1], [0], [0], [1], [0, 0, 1, 1], [], []>} : vector<8x4xf32>, vector<4x128xf32>, vector<8x128xf32> -> vector<8x128xf32>
    %c0_5 = arith.constant 0 : index
    %c0_6 = arith.constant 0 : index
    %7 = vector.load %arg4[%c0_5, %c0_6] : memref<8x1xf32, #tpu.memory_space<vmem>>, vector<8x1xf32>
    %8 = vector.broadcast %7 : vector<8x1xf32> to vector<8x128xf32>
    %9 = arith.addf %6, %8 : vector<8x128xf32>
    %c0_7 = arith.constant 0 : index
    %c0_8 = arith.constant 0 : index
    %c0_9 = arith.constant 0 : index
    %10 = vector.load %arg6[%c0_7, %c0_8, %c0_9] : memref<1x8x128xf32, #tpu.memory_space<vmem>>, vector<1x8x128xf32>
    %11 = vector.shape_cast %10 : vector<1x8x128xf32> to vector<8x128xf32>
    %12 = vector.shape_cast %9 : vector<8x128xf32> to vector<1x8x128xf32>
    tpu.vector_store %arg6[%c0_7, %c0_8, %c0_9], %12 {strides = array<i32>} : memref<1x8x128xf32, #tpu.memory_space<vmem>>, vector<1x8x128xf32>,
    return
  }
  func.func @transform_0(%arg0: i32, %arg1: i32) -> (i32, i32) {
    %c0_i32 = arith.constant 0 : i32
    %c0_i32_0 = arith.constant 0 : i32
    %c0_i32_1 = arith.constant 0 : i32
    return %c0_i32, %c0_i32_0 : i32, i32
  }
  func.func @transform_1(%arg0: i32, %arg1: i32) -> (i32, i32) {
    %c0_i32 = arith.constant 0 : i32
    %c0_i32_0 = arith.constant 0 : i32
    %c0_i32_1 = arith.constant 0 : i32
    return %c0_i32, %c0_i32_0 : i32, i32
  }
  func.func @transform_2(%arg0: i32, %arg1: i32) -> (i32, i32) {
    %c0_i32 = arith.constant 0 : i32
    %c0_i32_0 = arith.constant 0 : i32
    %c0_i32_1 = arith.constant 0 : i32
    return %c0_i32, %c0_i32_0 : i32, i32
  }
  func.func @transform_3(%arg0: i32, %arg1: i32) -> (i32, i32, i32) {
    %c0_i32 = arith.constant 0 : i32
    %c0_i32_0 = arith.constant 0 : i32
    return %arg0, %c0_i32, %arg1 : i32, i32, i32
  }
  func.func @transform_4(%arg0: i32, %arg1: i32) -> (i32, i32, i32) {
    %c0_i32 = arith.constant 0 : i32
    %c0_i32_0 = arith.constant 0 : i32
    return %arg0, %c0_i32, %arg1 : i32, i32, i32
  }
}

</mosaic_0001>

<bundles_post_ra>
// kernel: tpu_custom_call.1
= control target key start
LH: loop header
LB: loop body
LE: loop exit
PB: predicated region body
PF: predicated region fallthrough
CT: control target
= control target key end

     0   :  { %9 = vsyncpa [#allocation4], 0  ;;  %s912_s0 = inlined_call_operand.vmem [shape: f32[8,4], index: 0, kind: input, shape index: {}]   ;;  %s913_s1 = inlined_call_operand.vmem [shape: f32[8,1], index: 1, kind: input, shape index: {}]   ;;  %s914_s2 = inlined_call_operand.vmem [shape: f32[8,1], index: 2, kind: input, shape index: {}]   ;;  %s915_s3 = inlined_call_operand.vmem [shape: f32[2,4,256], index: 3, kind: input, shape index: {}]   ;;  %s916_s4 = inlined_call_operand.hbm [shape: f32[2,8,256], index: 4, kind: output, shape index: {}]  }
   0x1   :  { %11 = vsyncpa [#allocation4 + $0x1], 0  ;;  %s741_s15 = smov 0   ;;  %s743_s16 = smov 0  }
   0x2   :  { %s745_s17 = smov 0   ;;  %s747_s18 = smov 0  }
   0x3   :  { %s749_s19 = smov 0   ;;  %s751_s20 = smov 0  }
   0x4   :  { %s753_s21 = smov 0   ;;  %s755_s22 = smov 0  }
   0x5 LB: > { %s493_s23 = sadd.s32 4294967295, %s709_s22   ;;  %s494_s24 = sadd.s32 4294967294, %s709_s22   ;;  %s709_s22 = sphi %s755_s22, %s17_s22   ;;  %s705_s21 = sphi %s753_s21, %s927_s21   ;;  %s701_s20 = sphi %s751_s20, %s926_s20   ;;  %s697_s19 = sphi %s749_s19, %s925_s19   ;;  %s693_s18 = sphi %s747_s18, %s924_s18   ;;  %s689_s17 = sphi %s745_s17, %s923_s17   ;;  %s685_s16 = sphi %s743_s16, %s922_s16   ;;  %s681_s15 = sphi %s741_s15, %s921_s15  }
   0x6   : > { %s26_s25 = sadd.s32 1, %s701_s20  ;;  %s29_s26 = sadd.s32 1, %s705_s21 }
   0x7   : > { %p27_p0 = scmp.ge.s32.totalorder %s26_s25, 2  ;;  %p139_p1 = scmp.ne.s32.totalorder %s689_s17, %s685_s16 }
   0x8   : > { %p140_p2 = scmp.eq.s32.totalorder %s493_s23, 3  ;;  %p145_p5 = scmp.ne.s32.totalorder %s685_s16, %s681_s15 }
   0x9   : > { %s929_s25 = smov (%p27_p0, %s26_s25), 0  ;;  %s931_s26 = smov (!%p27_p0, %s29_s26), %s705_s21 }
   0xa   : > { %s125_s27 = ssub.s32 %s701_s20, %s929_s25  ;;  %p792_p3 = por %p140_p2, %p139_p1 }
   0xb   : > { %p31_p4 = scmp.ge.s32.totalorder %s931_s26, 2  ;;  %p146_p6 = scmp.eq.s32.totalorder %s494_s24, 3 }
   0xc   : > { %p497_p7 = scmp.ge.s32.totalorder %s709_s22, 1  ;;  %p184_p9 = scmp.lt.s32.totalorder %s709_s22, 5 }
   0xd   : > { %s933_s26 = smov (%p31_p4, %s931_s26), 0  ;;  %p801_p8 = por %p146_p6, %p145_p5 }
   0xe   : > { %s124_s30 = ssub.s32 %s705_s21, %s933_s26  ;;  %s129_s5 = sadd.s32 1, %s689_s17 }
   0xf   : > { %s126_s6 = sor.u32 %s125_s27, %s124_s30  ;;  %p185_p10 = pnand %p497_p7, %p184_p9 }
  0x10   : > { %p127_p11 = scmp.eq.s32.totalorder %s126_s6, 0  ;;  %s917_s8 = sand.u32 (!%p185_p10), 1, %s685_s16  }
  0x11   : > { %188 = sbr.rel (%p185_p10) target bundleno = 1402 (0x57a), region = 36  ;;  %p213_p12 = scmp.lt.s32.totalorder (!%p185_p10), %s697_s19, 1 }
  0x12   : > { %s810_s7 = scalar_select %p127_p11, %s689_s17, %s129_s5  }
  0x13   : > { %s816_s9 = sshll.u32 (!%p185_p10), %s917_s8, 3  ;;  %p215_p13 = scmp.lt.s32.totalorder (!%p185_p10), %s693_s18, 1 }
  0x14   : > { %s212_s30 = scalar_lea.vmem (!%p185_p10), [#allocation3], %s816_s9  ;;  %p501_p0 = scmp.ne.s32.totalorder (!%p185_p10), %s693_s18, 0 }
  0x18   : > { %s214_s10 = scalar_select %p213_p12, %s697_s19, 1 }
  0x19   : > { %s216_s11 = scalar_select %p215_p13, %s693_s18, 1 }
  0x1a   : > { %s499_s12 = sshll.u32 %s214_s10, 1  ;;  %224 = sbr.rel (%p501_p0) target bundleno = 1167 (0x48f), region = 40  ;;  %v226_v0 = vld [vmem:[%s913_s1] sm:$0xff] (!%p501_p0)  ;;  %v711_v1 = vmov (!%p501_p0), 0   ;;  %vm233_vm0 = vcmask (!%p501_p0), 31744   ;;  %vm242_vm1 = vcmask (!%p501_p0), 24576  }
  0x1b   : > { %s218_s13 = sadd.s32 %s499_s12, %s216_s11  ;;  %603 = vset.pattern.permute.xlu0 (!%p501_p0), %v711_v1  ;;  %v834_v2 = vld [vmem:[%s912_s0] sm:$0xff] (!%p501_p0)  ;;  %vm271_vm4 = vcmask (!%p501_p0), 7168  }
  0x1c   : > { %s500_s14 = sshll.u32 %s218_s13, 2  ;;  %229 = vperm.xlu0 (!%p501_p0), %603, %v226_v0  }
  0x1d   : > { %s824_s27 = scalar_lea.vmem %s915_s3, %s500_s14 }
  0x9b   : > { %v230_v3 = vpop.permute.xlu0 %229 }
  0x9c   : > { %v232_v4 = vmul.f32 %v230_v3, %v834_v2 }
  0x9e   : > { %v234_v5 = vsel %vm233_vm0, %v232_v4, 0.0 }
  0x9f   : > { %v235_v6 = vrot.slane %v234_v5, 4 }
  0xa1   : > { %v236_v7 = vadd.f32 %v235_v6, %v234_v5 }
  0xa3   : > { %v237_v8 = vrot.slane %v236_v7, 2 }
  0xa5   : > { %v238_v9 = vadd.f32 %v237_v8, %v236_v7 }
  0xa7   : > { %v239_v10 = vrot.slane %v238_v9, 1 }
  0xa9   : > { %v240_v11 = vadd.f32 %v239_v10, %v238_v9 }
  0xab   : > { %v241_v12 = vmul.f32 %v240_v11, %v240_v11 }
  0xad   : > { %v243_v13 = vsel %vm242_vm1, %v241_v12, 0.0 }
  0xae   : > { %244 = vadd.xlane.f32.xlu0 %v243_v13 }
 0x13b   : > { %v245_v14 = vpop.xlane.xlu0 %244 }
 0x13c   : > { %v246_v15 = vrot.slane %v245_v14, 4 }
 0x13e   : > { %v247_v16 = vadd.f32 %v246_v15, %v245_v14 }
 0x140   : > { %v248_v17 = vrot.slane %v247_v16, 2 }
 0x142   : > { %v249_v18 = vadd.f32 %v248_v17, %v247_v16 }
 0x144   : > { %v250_v19 = vrot.slane %v249_v18, 1 }
 0x146   : > { %v251_v20 = vadd.f32 %v250_v19, %v249_v18 }
 0x148   : > { %516 = vpush %v251_v20 }
 0x179   : > { %s517_s8 = spop %516 }
 0x17a   : > { %v253_v21 = vstv %s517_s8 }
 0x17b   : > { %604 = vrsqrt.f32 %v253_v21  ;;  %vm256_vm2 = vcmp.eq.f32.partialorder %v253_v21, inf  ;;  %v259_v24 = vand.u32 2147483648, %v253_v21  ;;  %vm258_vm3 = vcmp.eq.f32.partialorder %v253_v21, 0.0 }
 0x185   : > { %v605_v22 = vpop.eup %604 }
 0x186   : > { %v255_v23 = vmul.f32 %v605_v22, %v253_v21 }
 0x188   : > { %v257_v25 = vsel %vm256_vm2, %v253_v21, %v255_v23 }
 0x189   : > { %v260_v26 = vsel %vm258_vm3, %v259_v24, %v257_v25 }
 0x18a   : > { %518 = vpush %v260_v26 }
 0x1bb   : > { %s519_s11 = spop %518 }
 0x1bc   : > { %s262_s12 = sadd.f32 1e-12, %s519_s11 }
 0x1be   : > { %v263_v27 = vstv %s262_s12 }
 0x1bf   : > { %606 = vrcp.f32 %v263_v27 }
 0x1c9   : > { %v607_v28 = vpop.eup %606 }
 0x1ca   : > { %v265_v29 = vmul.f32 %v607_v28, %v240_v11 }
 0x1cc   : > { %v266_v30 = vmul.f32 %v265_v29, %v834_v2 }
 0x1ce   : > { %v267_v31 = vsel %vm233_vm0, %v266_v30, 0.0 }
 0x1cf   : > { %268 = vadd.xlane.f32.xlu1 %v267_v31 }
 0x25c   : > { %v269_v32 = vpop.xlane.xlu1 %268 }
 0x25d   : > { %v270_v33 = vmul.f32 %v269_v32, %v269_v32 }
 0x25f   : > { %v272_v34 = vsel %vm271_vm4, %v270_v33, 0.0 }
 0x260   : > { %273 = vadd.xlane.f32.xlu1 %v272_v34 }
 0x2ed   : > { %v274_v35 = vpop.xlane.xlu1 %273 }
 0x2ee   : > { %v275_v36 = vrot.slane %v274_v35, 4 }
 0x2f0   : > { %v276_v37 = vadd.f32 %v275_v36, %v274_v35 }
 0x2f2   : > { %v277_v38 = vrot.slane %v276_v37, 2 }
 0x2f4   : > { %v278_v39 = vadd.f32 %v277_v38, %v276_v37 }
 0x2f6   : > { %v279_v40 = vrot.slane %v278_v39, 1 }
 0x2f8   : > { %v280_v41 = vadd.f32 %v279_v40, %v278_v39 }
 0x2fa   : > { %520 = vpush %v280_v41 }
 0x32b   : > { %s521_s13 = spop %520 }
 0x32c   : > { %v282_v42 = vstv %s521_s13 }
 0x32d   : > { %608 = vrsqrt.f32 %v282_v42  ;;  %vm285_vm5 = vcmp.eq.f32.partialorder %v282_v42, inf  ;;  %v288_v45 = vand.u32 2147483648, %v282_v42  ;;  %vm287_vm6 = vcmp.eq.f32.partialorder %v282_v42, 0.0 }
 0x337   : > { %v609_v43 = vpop.eup %608 }
 0x338   : > { %v284_v44 = vmul.f32 %v609_v43, %v282_v42 }
 0x33a   : > { %v286_v46 = vsel %vm285_vm5, %v282_v42, %v284_v44 }
 0x33b   : > { %v289_v47 = vsel %vm287_vm6, %v288_v45, %v286_v46 }
 0x33c   : > { %522 = vpush %v289_v47 }
 0x36d   : > { %s523_s14 = spop %522 }
 0x36e   : > { %s291_s23 = sadd.f32 1e-12, %s523_s14 }
 0x370   : > { %v292_v48 = vstv %s291_s23 }
 0x371   : > { %610 = vrcp.f32 %v292_v48 }
 0x37b   : > { %v611_v49 = vpop.eup %610 }
 0x37c   : > { %v294_v50 = vmul.f32 %v611_v49, %v269_v32 }
 0x37e   : > { %v295_v51 = vmul.f32 %v294_v50, %v269_v32 }
 0x380   : > { %v296_v52 = vsel %vm271_vm4, %v295_v51, 0.0 }
 0x381   : > { %297 = vadd.xlane.f32.xlu1 %v296_v52 }
 0x40e   : > { %v298_v53 = vpop.xlane.xlu1 %297 }
 0x40f   : > { %v299_v54 = vrot.slane %v298_v53, 4 }
 0x411   : > { %v300_v55 = vadd.f32 %v299_v54, %v298_v53 }
 0x413   : > { %v301_v56 = vrot.slane %v300_v55, 2 }
 0x415   : > { %v302_v57 = vadd.f32 %v301_v56, %v300_v55 }
 0x417   : > { %v303_v58 = vrot.slane %v302_v57, 1 }
 0x419   : > { %v304_v59 = vadd.f32 %v303_v58, %v302_v57 }
 0x41b   : > { %524 = vpush %v304_v59 }
 0x44c   : > { %s525_s24 = spop %524 }
 0x44d   : > { %v306_v60 = vstv %s525_s24 }
 0x44e   : > { %612 = vrcp.f32 %v306_v60 }
 0x458   : > { %v613_v61 = vpop.eup %612 }
 0x459   : > { %526 = vpush %v613_v61 }
 0x48a   : > { %s527_s5 = spop %526 }
 0x48b   : > { %v309_v62 = vstv %s527_s5 }
 0x48c   : > { %v310_v63 = vmul.f32 %v309_v62, %v834_v2 }
 0x48e   : > { %311 = vst.msk [vmem:[#allocation2] sm:$0xff] %vm233_vm0, %v310_v63 }
 0x48f PF: > { %v312_v0 = vld [vmem:[%s824_s27] sm:$0xf]  ;;  %vm324_vm7 = vcmask 1043456   ;;  %v712_v3 = vmov 0.0   ;;  %vm713_vm8 = vmmov 0   ;;  %vm320_vm9 = vcmask 31744  }
 0x490   : > { %511 = vmatprep.subr.mxu0 %v712_v3  ;;  %513 = vmatprep.mubr.msk.f32.mxu0 %vm713_vm8, %v712_v3  ;;  %v314_v4 = vld [vmem:[%s914_s2] sm:$0xff]  ;;  %v714_v2 = vmov 0   ;;  %s505_s27 = sshll.u32 %s697_s19, 1  ;;  %s415_s12 = sshll.u32 %s212_s30, 4  ;;  %s857_s12 = int_to_ptr.vmem [resolvable:$true] %s415_s12 }
 0x491   : > { %512 = vmatpush3.msk.msra.mxu0 %vm324_vm7, %v312_v0  ;;  %614 = vset.pattern.permute.xlu0 %v714_v2  ;;  %s411_s8 = sadd.s32 %s693_s18, %s505_s27  ;;  %s920_s18 = sand.u32 1, %s685_s16  }
 0x492   : > { %317 = vperm.xlu0 %614, %v314_v4   ;;  %s506_s11 = sshll.u32 %s411_s8, 7  ;;  %s400_s19 = scalar_lea.sflag [#allocation4], %s920_s18 }
 0x493   : > { %s855_s23 = scalar_lea.hbm %s916_s4, %s506_s11  ;;  %s615_s24 = scalar_lea.vmem %s857_s12, 128 }
 0x494   : > { %p616_p1 = scmp.ne.s32.totalorder %s857_s12, %s615_s24  ;;  %s715_s5 = smov [#allocation3]  }
 0x495   : > { %v313_v1 = vld [vmem:[#allocation2] sm:$0xff]  ;;  %s619_s6 = sshll.u32 %s715_s5, 4  ;;  %s620_s6 = int_to_ptr.vmem [resolvable:$false] %s619_s6 }
 0x496   : > { %514 = vmatmul.mubr.msk.f32.vlgmr.msra.gmra.mrb[0].mxu0 %vm320_vm9, %v313_v1  ;;  %p617_p2 = pnand %p616_p1, %p792_p3  ;;  %s621_s10 = scalar_lea.vmem %s620_s6, 256 }
 0x497   : > { %p622_p5 = scmp.lt.s32.totalorder %s857_s12, %s620_s6  ;;  %p623_p6 = scmp.lt.s32.totalorder %s621_s10, %s615_s24 }
 0x498   : > { %p618_p4 = pneg %p617_p2 }
 0x499   : > { %p624_p7 = por %p623_p6, %p622_p5 }
 0x49b   : > { %p625_p9 = pnand %p624_p7, %p618_p4 }
 0x511   : > { %v318_v5 = vpop.permute.xlu0 %317 }
 0x569   : > { %v394_v6 = vpop.f32.mrb[0].mxu0 }
 0x56a   : > { %v395_v7 = vadd.f32 %v394_v6, %v318_v5  ;;  %v515_v8 = vpop.f32.mrb[1].mxu0 }
 0x56c   : > { %398 = vst [vmem:[%s212_s30] sm:$0xff] %v395_v7 }
 0x56d   : > { %628 = shalt.err (!%p625_p9)
}
 0x56e   : > { %s629_s9 = scalar_lea.hbm %s855_s23, 128  ;;  %s633_s8 = scalar_lea.hbm %s916_s4, 512 }
 0x56f   : > { %p630_p10 = scmp.ne.s32.totalorder %s855_s23, %s629_s9  ;;  %p634_p13 = scmp.lt.u32.totalorder %s855_s23, %s916_s4 }
 0x570   : > { %p635_p0 = scmp.lt.u32.totalorder %s633_s8, %s629_s9  ;;  %p637_p2 = scmp.lt.u32.totalorder %s629_s9, %s855_s23 }
 0x571   : > { %p631_p11 = pnand %p630_p10, %p792_p3 }
 0x572   : > { %p636_p1 = por %p635_p0, %p634_p13 }
 0x573   : > { %p632_p12 = pneg %p631_p11 }
 0x574   : > { %p638_p4 = por %p637_p2, %p636_p1 }
 0x576   : > { %p639_p5 = pnand %p638_p4, %p632_p12 }
 0x578   : > { %642 = shalt.err (!%p639_p5)
}
 0x579   : > { %528 = dma.vmem_to_hbm [thread:$0]  (%p792_p3), %s857_s12, 128, %s855_s23, %s400_s19  }
 0x57a PF: > { %p534_p6 = scmp.ge.s32.totalorder %s709_s22, 2  ;;  %s427_s14 = sand.u32 1, %s681_s15  }
 0x57b   : > { %s428_s18 = scalar_lea.sflag [#allocation4], %s427_s14 }
 0x57c   : > { %p531_p7 = pnand %p534_p6, %p801_p8 }
 0x57e   : > { %676 = dma.done.wait (!%p531_p7), %s428_s18, 128  }
 0x57f   : > { %678 = vsyncadd (!%p531_p7), %s428_s18, 4294967168  ;;  %s17_s22 = sadd.s32 1, %s709_s22   ;;  %s921_s15 = smov %s685_s16 }
 0x580   : > { %p14_p9 = scmp.ge.s32.totalorder %s17_s22, 6   ;;  %s922_s16 = smov %s689_s17 }
 0x581   : > { %s923_s17 = smov %s810_s7  ;;  %s924_s18 = smov %s701_s20 }
 0x582   : > { %s925_s19 = smov %s705_s21  ;;  %s926_s20 = smov %s929_s25 }
 0x583   : > { %s927_s21 = smov %s933_s26  ;;  %16 = sbr.rel (!%p14_p9) target bundleno = 5 (0x5), region = 75 }
 0x58a   :  { %433 = vsyncpa [#allocation4], 1 }
 0x58b   :  { %435 = vsyncpa [#allocation4 + $0x1], 1 }

</bundles_post_ra>
